<compile_context>
chip_gen: v6e
topology: v6e:2x2x1
jax: 0.10.0
libtpu: 0.0.40
codegen_flags: <defaults>
</compile_context>

<pallas_src>
import jax
import jax.numpy as jnp
from jax.experimental import pallas as pl
from jax.experimental.pallas import tpu as pltpu

STEPS = 4
MULTIPLIER = 4
BN_EPS = 1e-5


def _stats_kernel(x0_ref, x1_ref, w_ref, sum_ref, sq_ref):
    """Pass 1: accumulate per-channel sum / sum-of-squares of the fused
    1x1-conv output over the whole (N, H*W) extent (global BN statistics)."""
    first = jnp.logical_and(pl.program_id(0) == 0, pl.program_id(1) == 0)

    @pl.when(first)
    def _():
        sum_ref[...] = jnp.zeros_like(sum_ref)
        sq_ref[...] = jnp.zeros_like(sq_ref)

    x = jnp.concatenate([x0_ref[...], x1_ref[...]], axis=0)          # (K, t) bf16
    x = jnp.maximum(x, 0)                                            # ReLU
    y = jnp.dot(w_ref[...], x, preferred_element_type=jnp.float32)   # (2C, t) f32
    sum_ref[...] += jnp.sum(y, axis=-1, keepdims=True)
    sq_ref[...] += jnp.sum(y * y, axis=-1, keepdims=True)


def _cell_out_kernel(x0_ref, x1_ref, w_ref, scale_ref, shift_ref, out_ref):
    """Pass 2: recompute conv, apply BN (precomputed f32 scale/shift), then the
    strength-reduced skip_connect cell: out = concat(T, 2T, 4T, 8T)."""
    x = jnp.concatenate([x0_ref[...], x1_ref[...]], axis=0)          # (K, t)
    x = jnp.maximum(x, 0)
    y = jnp.dot(w_ref[...], x, preferred_element_type=jnp.float32)   # (2C, t)
    y = y * scale_ref[...] + shift_ref[...]                          # BN (f32)
    c = y.shape[0] // 2
    t_state = y[:c] + y[c:]                                          # T = s0 + s1
    out_ref[0 * c:1 * c, :] = t_state
    out_ref[1 * c:2 * c, :] = 2.0 * t_state
    out_ref[2 * c:3 * c, :] = 4.0 * t_state
    out_ref[3 * c:4 * c, :] = 8.0 * t_state


def _pick_hw_tile(hw, cap=2048):
    """Largest multiple-of-128 divisor of hw (capped); full hw if none."""
    if hw % 128 != 0:
        return hw
    tile = 128
    for cand in range(256, min(hw, cap) + 1, 128):
        if hw % cand == 0:
            tile = cand
    return tile


@jax.jit
def cell_forward(s0_nchw, s1_nchw, w0, w1):
    """s0: (N, Cpp, H, W), s1: (N, Cp, H, W);  w0: (C, Cpp, 1, 1), w1: (C, Cp, 1, 1)
    returns (N, MULTIPLIER*C, H, W) float32."""
    N, Cpp, H, W = s0_nchw.shape
    _, Cp, _, _ = s1_nchw.shape
    C = w0.shape[0]
    HW = H * W
    M = N * HW
    t = _pick_hw_tile(HW)

    # NCHW -> (N, C, H*W): free reshape; channels land on sublanes and the
    # spatial extent on lanes (lane-dense, no wrapper transposes).
    x0 = s0_nchw.reshape(N, Cpp, HW).astype(jnp.bfloat16)
    x1 = s1_nchw.reshape(N, Cp, HW).astype(jnp.bfloat16)

    # Fuse the two 1x1 convs into one block-diagonal matmul weight (2C, Cpp+Cp).
    w_bd = jnp.zeros((2 * C, Cpp + Cp), jnp.float32)
    w_bd = w_bd.at[:C, :Cpp].set(w0.reshape(C, Cpp))
    w_bd = w_bd.at[C:, Cpp:].set(w1.reshape(C, Cp))
    w_bd = w_bd.astype(jnp.bfloat16)

    grid = (N, HW // t)

    x0_spec = pl.BlockSpec((None, Cpp, t), lambda n, j: (n, 0, j))
    x1_spec = pl.BlockSpec((None, Cp, t), lambda n, j: (n, 0, j))
    w_spec = pl.BlockSpec((2 * C, Cpp + Cp), lambda n, j: (0, 0))
    vec_spec = pl.BlockSpec((2 * C, 1), lambda n, j: (0, 0))

    # ---- pass 1: global per-channel BN statistics (resident accumulators).
    ch_sum, ch_sq = pl.pallas_call(
        _stats_kernel,
        out_shape=(jax.ShapeDtypeStruct((2 * C, 1), jnp.float32),
                   jax.ShapeDtypeStruct((2 * C, 1), jnp.float32)),
        grid=grid,
        in_specs=[x0_spec, x1_spec, w_spec],
        out_specs=(vec_spec, vec_spec),
        compiler_params=pltpu.CompilerParams(
            dimension_semantics=("arbitrary", "arbitrary")),
        cost_estimate=pl.CostEstimate(
            flops=2 * (Cpp + Cp) * 2 * C * M + 4 * C * M,
            transcendentals=0,
            bytes_accessed=(x0.size + x1.size) * 2 + 2 * 2 * C * 4),
    )(x0, x1, w_bd)

    # Training-mode BN (biased variance) -> per-channel scale/shift. O(C) work.
    mean = ch_sum / M
    var = jnp.maximum(ch_sq / M - mean * mean, 0.0)
    scale = jax.lax.rsqrt(var + BN_EPS)          # (2C, 1) f32
    shift = -mean * scale                        # (2C, 1) f32

    # ---- pass 2: normalize + strength-reduced cell, lane-dense output write.
    out = pl.pallas_call(
        _cell_out_kernel,
        out_shape=jax.ShapeDtypeStruct((N, MULTIPLIER * C, HW), jnp.float32),
        grid=grid,
        in_specs=[x0_spec, x1_spec, w_spec, vec_spec, vec_spec],
        out_specs=pl.BlockSpec((None, MULTIPLIER * C, t), lambda n, j: (n, 0, j)),
        compiler_params=pltpu.CompilerParams(
            dimension_semantics=("parallel", "parallel")),
        cost_estimate=pl.CostEstimate(
            flops=2 * (Cpp + Cp) * 2 * C * M + 8 * C * M,
            transcendentals=0,
            bytes_accessed=(x0.size + x1.size) * 2 + N * 4 * C * HW * 4),
    )(x0, x1, w_bd, scale, shift)

    # (N, 4C, H*W) -> NCHW: free reshape, no transpose.
    return out.reshape(N, MULTIPLIER * C, H, W)


def reference_forward(s0, s1, w0, w1):
    """Pure-JAX NCHW reference mirroring the PyTorch module (inputs fed to the
    1x1 conv in bf16 to match the kernel's bf16 feeding; BN and sums in f32)."""
    def rcb(x, w):  # x: (N, Cin, H, W), w: (Cout, Cin, 1, 1)
        xb = jnp.maximum(x, 0.0).astype(jnp.bfloat16)
        wb = w[:, :, 0, 0].astype(jnp.bfloat16)
        y = jnp.einsum("nchw,oc->nohw", xb, wb,
                       preferred_element_type=jnp.float32)
        mean = jnp.mean(y, axis=(0, 2, 3), keepdims=True)
        var = jnp.mean(jnp.square(y - mean), axis=(0, 2, 3), keepdims=True)
        return (y - mean) * jax.lax.rsqrt(var + BN_EPS)

    s0 = rcb(s0, w0)
    s1 = rcb(s1, w1)
    states = [s0, s1]
    for _ in range(STEPS):
        s = states[0]
        for h in states[1:]:
            s = s + h  # skip_connect -> identity
        states.append(s)
    return jnp.concatenate(states[-MULTIPLIER:], axis=1)


if __name__ == "__main__":
    key = jax.random.PRNGKey(0)
    k0, k1, k2, k3 = jax.random.split(key, 4)

    N, H, W = 2, 16, 16
    C_prev_prev, C_prev, C = 16, 24, 16

    s0 = jax.random.normal(k0, (N, C_prev_prev, H, W), dtype=jnp.float32)
    s1 = jax.random.normal(k1, (N, C_prev, H, W), dtype=jnp.float32)
    # PyTorch conv layout: (Cout, Cin, 1, 1)
    w0 = jax.random.normal(k2, (C, C_prev_prev, 1, 1), dtype=jnp.float32) * 0.1
    w1 = jax.random.normal(k3, (C, C_prev, 1, 1), dtype=jnp.float32) * 0.1

    out = cell_forward(s0, s1, w0, w1)
    out = jax.block_until_ready(out)

    ref = reference_forward(s0, s1, w0, w1)
    assert out.shape == (N, MULTIPLIER * C, H, W), out.shape
    max_err = float(jnp.max(jnp.abs(out - ref)))
    assert jnp.allclose(out, ref, atol=2e-3, rtol=2e-3), max_err

    print("KERNEL_OK")
</pallas_src>

<mosaic_0001>
module attributes {stable_mosaic.version = 11 : i64} {
  func.func @_stats_kernel(%arg0: i32, %arg1: i32, %arg2: memref<1x16x256xbf16, #tpu.memory_space<vmem>>, %arg3: memref<1x24x256xbf16, #tpu.memory_space<vmem>>, %arg4: memref<32x40xbf16, #tpu.memory_space<vmem>>, %arg5: memref<32x1xf32, #tpu.memory_space<vmem>>, %arg6: memref<32x1xf32, #tpu.memory_space<vmem>>) attributes {dimension_semantics = [#tpu.dimension_semantics<arbitrary>, #tpu.dimension_semantics<arbitrary>], iteration_bounds = array<i64: 2, 1>, scalar_prefetch = 0 : i64, scratch_operands = 0 : i64, tpu.core_type = #tpu.core_type<tc>, window_params = [{transform_indices = @transform_0, window_bounds = array<i64: 1, 16, 256>}, {transform_indices = @transform_1, window_bounds = array<i64: 1, 24, 256>}, {pipeline_mode = #tpu.pipeline_mode<synchronous>, transform_indices = @transform_2, window_bounds = array<i64: 32, 40>}, {pipeline_mode = #tpu.pipeline_mode<synchronous>, transform_indices = @transform_3, window_bounds = array<i64: 32, 1>}, {pipeline_mode = #tpu.pipeline_mode<synchronous>, transform_indices = @transform_4, window_bounds = array<i64: 32, 1>}]} {
    %c0_i32 = arith.constant 0 : i32
    %0 = arith.cmpi eq, %arg0, %c0_i32 : i32
    %c0_i32_0 = arith.constant 0 : i32
    %1 = arith.cmpi eq, %arg1, %c0_i32_0 : i32
    %2 = arith.andi %0, %1 : i1
    %3 = arith.extui %2 : i1 to i32
    %c0_i32_1 = arith.constant 0 : i32
    %4 = arith.cmpi ne, %3, %c0_i32_1 : i32
    scf.if %4 {
      %cst_20 = arith.constant 0.000000e+00 : f32
      %25 = vector.broadcast %cst_20 : f32 to vector<32x1xf32>
      %c0_21 = arith.constant 0 : index
      %c0_22 = arith.constant 0 : index
      %26 = vector.load %arg5[%c0_21, %c0_22] : memref<32x1xf32, #tpu.memory_space<vmem>>, vector<32x1xf32>
      tpu.vector_store %arg5[%c0_21, %c0_22], %25 {strides = array<i32>} : memref<32x1xf32, #tpu.memory_space<vmem>>, vector<32x1xf32>,
      %cst_23 = arith.constant 0.000000e+00 : f32
      %27 = vector.broadcast %cst_23 : f32 to vector<32x1xf32>
      %c0_24 = arith.constant 0 : index
      %c0_25 = arith.constant 0 : index
      %28 = vector.load %arg6[%c0_24, %c0_25] : memref<32x1xf32, #tpu.memory_space<vmem>>, vector<32x1xf32>
      tpu.vector_store %arg6[%c0_24, %c0_25], %27 {strides = array<i32>} : memref<32x1xf32, #tpu.memory_space<vmem>>, vector<32x1xf32>,
    } else {
    }
    %c0 = arith.constant 0 : index
    %c0_2 = arith.constant 0 : index
    %c0_3 = arith.constant 0 : index
    %5 = vector.load %arg2[%c0, %c0_2, %c0_3] : memref<1x16x256xbf16, #tpu.memory_space<vmem>>, vector<1x16x256xbf16>
    %6 = vector.shape_cast %5 : vector<1x16x256xbf16> to vector<16x256xbf16>
    %c0_4 = arith.constant 0 : index
    %c0_5 = arith.constant 0 : index
    %c0_6 = arith.constant 0 : index
    %7 = vector.load %arg3[%c0_4, %c0_5, %c0_6] : memref<1x24x256xbf16, #tpu.memory_space<vmem>>, vector<1x24x256xbf16>
    %8 = vector.shape_cast %7 : vector<1x24x256xbf16> to vector<24x256xbf16>
    %9 = tpu.concatenate %6, %8 in 0 : vector<16x256xbf16>, vector<24x256xbf16> -> vector<40x256xbf16>
    %cst = arith.constant 0.000000e+00 : bf16
    %10 = vector.broadcast %cst : bf16 to vector<40x256xbf16>
    %11 = arith.maximumf %9, %10 : vector<40x256xbf16>
    %c0_7 = arith.constant 0 : index
    %c0_8 = arith.constant 0 : index
    %12 = vector.load %arg4[%c0_7, %c0_8] : memref<32x40xbf16, #tpu.memory_space<vmem>>, vector<32x40xbf16>
    %cst_9 = arith.constant dense<0.000000e+00> : vector<32x256xf32>
    %13 = tpu.matmul %12, %11, %cst_9 {dimension_numbers = #tpu.dot_dimension_numbers<[1], [0], [0], [1], [0, 0, 1, 1], [], []>} : vector<32x40xbf16>, vector<40x256xbf16>, vector<32x256xf32> -> vector<32x256xf32>
    %c0_10 = arith.constant 0 : index
    %c0_11 = arith.constant 0 : index
    %14 = vector.load %arg5[%c0_10, %c0_11] : memref<32x1xf32, #tpu.memory_space<vmem>>, vector<32x1xf32>
    %cst_12 = arith.constant dense<0.000000e+00> : vector<32xf32>
    %15 = vector.multi_reduction <add>, %13, %cst_12 [1] : vector<32x256xf32> to vector<32xf32>
    %16 = vector.shape_cast %15 : vector<32xf32> to vector<32x1xf32>
    %17 = arith.addf %14, %16 : vector<32x1xf32>
    %c0_13 = arith.constant 0 : index
    %c0_14 = arith.constant 0 : index
    %18 = vector.load %arg5[%c0_13, %c0_14] : memref<32x1xf32, #tpu.memory_space<vmem>>, vector<32x1xf32>
    tpu.vector_store %arg5[%c0_13, %c0_14], %17 {strides = array<i32>} : memref<32x1xf32, #tpu.memory_space<vmem>>, vector<32x1xf32>,
    %c0_15 = arith.constant 0 : index
    %c0_16 = arith.constant 0 : index
    %19 = vector.load %arg6[%c0_15, %c0_16] : memref<32x1xf32, #tpu.memory_space<vmem>>, vector<32x1xf32>
    %20 = arith.mulf %13, %13 : vector<32x256xf32>
    %cst_17 = arith.constant dense<0.000000e+00> : vector<32xf32>
    %21 = vector.multi_reduction <add>, %20, %cst_17 [1] : vector<32x256xf32> to vector<32xf32>
    %22 = vector.shape_cast %21 : vector<32xf32> to vector<32x1xf32>
    %23 = arith.addf %19, %22 : vector<32x1xf32>
    %c0_18 = arith.constant 0 : index
    %c0_19 = arith.constant 0 : index
    %24 = vector.load %arg6[%c0_18, %c0_19] : memref<32x1xf32, #tpu.memory_space<vmem>>, vector<32x1xf32>
    tpu.vector_store %arg6[%c0_18, %c0_19], %23 {strides = array<i32>} : memref<32x1xf32, #tpu.memory_space<vmem>>, vector<32x1xf32>,
    return
  }
  func.func @transform_0(%arg0: i32, %arg1: i32) -> (i32, i32, i32) {
    %c0_i32 = arith.constant 0 : i32
    %c0_i32_0 = arith.constant 0 : i32
    return %arg0, %c0_i32, %arg1 : i32, i32, i32
  }
  func.func @transform_1(%arg0: i32, %arg1: i32) -> (i32, i32, i32) {
    %c0_i32 = arith.constant 0 : i32
    %c0_i32_0 = arith.constant 0 : i32
    return %arg0, %c0_i32, %arg1 : i32, i32, i32
  }
  func.func @transform_2(%arg0: i32, %arg1: i32) -> (i32, i32) {
    %c0_i32 = arith.constant 0 : i32
    %c0_i32_0 = arith.constant 0 : i32
    %c0_i32_1 = arith.constant 0 : i32
    return %c0_i32, %c0_i32_0 : i32, i32
  }
  func.func @transform_3(%arg0: i32, %arg1: i32) -> (i32, i32) {
    %c0_i32 = arith.constant 0 : i32
    %c0_i32_0 = arith.constant 0 : i32
    %c0_i32_1 = arith.constant 0 : i32
    return %c0_i32, %c0_i32_0 : i32, i32
  }
  func.func @transform_4(%arg0: i32, %arg1: i32) -> (i32, i32) {
    %c0_i32 = arith.constant 0 : i32
    %c0_i32_0 = arith.constant 0 : i32
    %c0_i32_1 = arith.constant 0 : i32
    return %c0_i32, %c0_i32_0 : i32, i32
  }
}

module attributes {stable_mosaic.version = 11 : i64} {
  func.func @_cell_out_kernel(%arg0: i32, %arg1: i32, %arg2: memref<1x16x256xbf16, #tpu.memory_space<vmem>>, %arg3: memref<1x24x256xbf16, #tpu.memory_space<vmem>>, %arg4: memref<32x40xbf16, #tpu.memory_space<vmem>>, %arg5: memref<32x1xf32, #tpu.memory_space<vmem>>, %arg6: memref<32x1xf32, #tpu.memory_space<vmem>>, %arg7: memref<1x64x256xf32, #tpu.memory_space<vmem>>) attributes {dimension_semantics = [#tpu.dimension_semantics<parallel>, #tpu.dimension_semantics<parallel>], iteration_bounds = array<i64: 2, 1>, scalar_prefetch = 0 : i64, scratch_operands = 0 : i64, tpu.core_type = #tpu.core_type<tc>, window_params = [{transform_indices = @transform_0, window_bounds = array<i64: 1, 16, 256>}, {transform_indices = @transform_1, window_bounds = array<i64: 1, 24, 256>}, {pipeline_mode = #tpu.pipeline_mode<synchronous>, transform_indices = @transform_2, window_bounds = array<i64: 32, 40>}, {pipeline_mode = #tpu.pipeline_mode<synchronous>, transform_indices = @transform_3, window_bounds = array<i64: 32, 1>}, {pipeline_mode = #tpu.pipeline_mode<synchronous>, transform_indices = @transform_4, window_bounds = array<i64: 32, 1>}, {transform_indices = @transform_5, window_bounds = array<i64: 1, 64, 256>}]} {
    %c0 = arith.constant 0 : index
    %c0_0 = arith.constant 0 : index
    %c0_1 = arith.constant 0 : index
    %0 = vector.load %arg2[%c0, %c0_0, %c0_1] : memref<1x16x256xbf16, #tpu.memory_space<vmem>>, vector<1x16x256xbf16>
    %1 = vector.shape_cast %0 : vector<1x16x256xbf16> to vector<16x256xbf16>
    %c0_2 = arith.constant 0 : index
    %c0_3 = arith.constant 0 : index
    %c0_4 = arith.constant 0 : index
    %2 = vector.load %arg3[%c0_2, %c0_3, %c0_4] : memref<1x24x256xbf16, #tpu.memory_space<vmem>>, vector<1x24x256xbf16>
    %3 = vector.shape_cast %2 : vector<1x24x256xbf16> to vector<24x256xbf16>
    %4 = tpu.concatenate %1, %3 in 0 : vector<16x256xbf16>, vector<24x256xbf16> -> vector<40x256xbf16>
    %cst = arith.constant 0.000000e+00 : bf16
    %5 = vector.broadcast %cst : bf16 to vector<40x256xbf16>
    %6 = arith.maximumf %4, %5 : vector<40x256xbf16>
    %c0_5 = arith.constant 0 : index
    %c0_6 = arith.constant 0 : index
    %7 = vector.load %arg4[%c0_5, %c0_6] : memref<32x40xbf16, #tpu.memory_space<vmem>>, vector<32x40xbf16>
    %cst_7 = arith.constant dense<0.000000e+00> : vector<32x256xf32>
    %8 = tpu.matmul %7, %6, %cst_7 {dimension_numbers = #tpu.dot_dimension_numbers<[1], [0], [0], [1], [0, 0, 1, 1], [], []>} : vector<32x40xbf16>, vector<40x256xbf16>, vector<32x256xf32> -> vector<32x256xf32>
    %c0_8 = arith.constant 0 : index
    %c0_9 = arith.constant 0 : index
    %9 = vector.load %arg5[%c0_8, %c0_9] : memref<32x1xf32, #tpu.memory_space<vmem>>, vector<32x1xf32>
    %10 = vector.broadcast %9 : vector<32x1xf32> to vector<32x256xf32>
    %11 = arith.mulf %8, %10 : vector<32x256xf32>
    %c0_10 = arith.constant 0 : index
    %c0_11 = arith.constant 0 : index
    %12 = vector.load %arg6[%c0_10, %c0_11] : memref<32x1xf32, #tpu.memory_space<vmem>>, vector<32x1xf32>
    %13 = vector.broadcast %12 : vector<32x1xf32> to vector<32x256xf32>
    %14 = arith.addf %11, %13 : vector<32x256xf32>
    %15 = vector.extract_strided_slice %14 {offsets = [0, 0], sizes = [16, 256], strides = [1, 1]} : vector<32x256xf32> to vector<16x256xf32>
    %16 = vector.extract_strided_slice %14 {offsets = [16, 0], sizes = [16, 256], strides = [1, 1]} : vector<32x256xf32> to vector<16x256xf32>
    %17 = arith.addf %15, %16 : vector<16x256xf32>
    %c0_12 = arith.constant 0 : index
    %c0_13 = arith.constant 0 : index
    %c0_14 = arith.constant 0 : index
    %18 = vector.load %arg7[%c0_12, %c0_13, %c0_14] : memref<1x64x256xf32, #tpu.memory_space<vmem>>, vector<1x16x256xf32>
    %19 = vector.shape_cast %18 : vector<1x16x256xf32> to vector<16x256xf32>
    %20 = vector.shape_cast %17 : vector<16x256xf32> to vector<1x16x256xf32>
    tpu.vector_store %arg7[%c0_12, %c0_13, %c0_14], %20 {strides = array<i32>} : memref<1x64x256xf32, #tpu.memory_space<vmem>>, vector<1x16x256xf32>,
    %cst_15 = arith.constant 2.000000e+00 : f32
    %21 = vector.broadcast %cst_15 : f32 to vector<16x256xf32>
    %22 = arith.mulf %21, %17 : vector<16x256xf32>
    %c0_16 = arith.constant 0 : index
    %c16 = arith.constant 16 : index
    %c0_17 = arith.constant 0 : index
    %23 = vector.load %arg7[%c0_16, %c16, %c0_17] : memref<1x64x256xf32, #tpu.memory_space<vmem>>, vector<1x16x256xf32>
    %24 = vector.shape_cast %23 : vector<1x16x256xf32> to vector<16x256xf32>
    %25 = vector.shape_cast %22 : vector<16x256xf32> to vector<1x16x256xf32>
    tpu.vector_store %arg7[%c0_16, %c16, %c0_17], %25 {strides = array<i32>} : memref<1x64x256xf32, #tpu.memory_space<vmem>>, vector<1x16x256xf32>,
    %cst_18 = arith.constant 4.000000e+00 : f32
    %26 = vector.broadcast %cst_18 : f32 to vector<16x256xf32>
    %27 = arith.mulf %26, %17 : vector<16x256xf32>
    %c0_19 = arith.constant 0 : index
    %c32 = arith.constant 32 : index
    %c0_20 = arith.constant 0 : index
    %28 = vector.load %arg7[%c0_19, %c32, %c0_20] : memref<1x64x256xf32, #tpu.memory_space<vmem>>, vector<1x16x256xf32>
    %29 = vector.shape_cast %28 : vector<1x16x256xf32> to vector<16x256xf32>
    %30 = vector.shape_cast %27 : vector<16x256xf32> to vector<1x16x256xf32>
    tpu.vector_store %arg7[%c0_19, %c32, %c0_20], %30 {strides = array<i32>} : memref<1x64x256xf32, #tpu.memory_space<vmem>>, vector<1x16x256xf32>,
    %cst_21 = arith.constant 8.000000e+00 : f32
    %31 = vector.broadcast %cst_21 : f32 to vector<16x256xf32>
    %32 = arith.mulf %31, %17 : vector<16x256xf32>
    %c0_22 = arith.constant 0 : index
    %c48 = arith.constant 48 : index
    %c0_23 = arith.constant 0 : index
    %33 = vector.load %arg7[%c0_22, %c48, %c0_23] : memref<1x64x256xf32, #tpu.memory_space<vmem>>, vector<1x16x256xf32>
    %34 = vector.shape_cast %33 : vector<1x16x256xf32> to vector<16x256xf32>
    %35 = vector.shape_cast %32 : vector<16x256xf32> to vector<1x16x256xf32>
    tpu.vector_store %arg7[%c0_22, %c48, %c0_23], %35 {strides = array<i32>} : memref<1x64x256xf32, #tpu.memory_space<vmem>>, vector<1x16x256xf32>,
    return
  }
  func.func @transform_0(%arg0: i32, %arg1: i32) -> (i32, i32, i32) {
    %c0_i32 = arith.constant 0 : i32
    %c0_i32_0 = arith.constant 0 : i32
    return %arg0, %c0_i32, %arg1 : i32, i32, i32
  }
  func.func @transform_1(%arg0: i32, %arg1: i32) -> (i32, i32, i32) {
    %c0_i32 = arith.constant 0 : i32
    %c0_i32_0 = arith.constant 0 : i32
    return %arg0, %c0_i32, %arg1 : i32, i32, i32
  }
  func.func @transform_2(%arg0: i32, %arg1: i32) -> (i32, i32) {
    %c0_i32 = arith.constant 0 : i32
    %c0_i32_0 = arith.constant 0 : i32
    %c0_i32_1 = arith.constant 0 : i32
    return %c0_i32, %c0_i32_0 : i32, i32
  }
  func.func @transform_3(%arg0: i32, %arg1: i32) -> (i32, i32) {
    %c0_i32 = arith.constant 0 : i32
    %c0_i32_0 = arith.constant 0 : i32
    %c0_i32_1 = arith.constant 0 : i32
    return %c0_i32, %c0_i32_0 : i32, i32
  }
  func.func @transform_4(%arg0: i32, %arg1: i32) -> (i32, i32) {
    %c0_i32 = arith.constant 0 : i32
    %c0_i32_0 = arith.constant 0 : i32
    %c0_i32_1 = arith.constant 0 : i32
    return %c0_i32, %c0_i32_0 : i32, i32
  }
  func.func @transform_5(%arg0: i32, %arg1: i32) -> (i32, i32, i32) {
    %c0_i32 = arith.constant 0 : i32
    %c0_i32_0 = arith.constant 0 : i32
    return %arg0, %c0_i32, %arg1 : i32, i32, i32
  }
}

</mosaic_0001>

<bundles_post_ra>
// kernel: cell_forward.3
= control target key start
LH: loop header
LB: loop body
LE: loop exit
PB: predicated region body
PF: predicated region fallthrough
CT: control target
= control target key end

     0   :  { %s745_s18 = smov 0   ;;  %s747_s19 = smov 0   ;;  %s834_s0 = inlined_call_operand.vmem [shape: bf16[2,16,256], index: 0, kind: input, shape index: {}]   ;;  %s835_s1 = inlined_call_operand.vmem [shape: bf16[2,24,256], index: 1, kind: input, shape index: {}]   ;;  %s836_s2 = inlined_call_operand.vmem [shape: bf16[32,40], index: 2, kind: input, shape index: {}]   ;;  %s837_s3 = inlined_call_operand.vmem [shape: f32[32,1], index: 3, kind: input, shape index: {}]   ;;  %s838_s4 = inlined_call_operand.vmem [shape: f32[32,1], index: 4, kind: input, shape index: {}]   ;;  %s839_s5 = inlined_call_operand.vmem [shape: f32[2,64,256], index: 5, kind: output, shape index: {}]  }
   0x1   :  { %s749_s20 = smov 0  }
   0x2 LB: > { %s27_s21 = sadd.s32 1, %s708_s19  ;;  %p625_p0 = scmp.ge.s32.totalorder %s712_s20, 1  ;;  %s712_s20 = sphi %s749_s20, %s15_s20   ;;  %s708_s19 = sphi %s747_s19, %s841_s19   ;;  %s704_s18 = sphi %s745_s18, %s840_s18  }
   0x3   : > { %p29_p1 = scmp.ge.s32.totalorder %s27_s21, 2  ;;  %p225_p2 = scmp.lt.s32.totalorder %s712_s20, 3 }
   0x5   : > { %s843_s21 = smov (%p29_p1, %s27_s21), 0  ;;  %p226_p3 = pnand %p625_p0, %p225_p2 }
   0x6   : > { %p271_p4 = scmp.lt.s32.totalorder (!%p226_p3), %s704_s18, 1 }
   0x7   : > { %229 = sbr.rel (%p226_p3) target bundleno = 243 (0xf3), region = 40 }
   0xc   : > { %v714_v0 = vmov 0   ;;  %s845_s18 = smov (!%p271_p4, %s704_s18), 1  ;;  %v422_v1 = vld [vmem:[%s837_s3 + $0x10] sm:$0xff]  ;;  %v420_v2 = vld [vmem:[%s837_s3] sm:$0xff]  ;;  %v423_v3 = vld [vmem:[%s837_s3 + $0x18] sm:$0xff]  ;;  %vm360_vm0 = vcmask 1043456  }
   0xd   : > { %399 = vmatprep.mubr.bf16.mxu0 %v714_v0  ;;  %409 = vmatprep.mubr.bf16.mxu1 %v714_v0  ;;  %s652_s26 = smul.u32 24, %s845_s18  ;;  %v421_v4 = vld [vmem:[%s837_s3 + $0x8] sm:$0xff]  ;;  %s644_s6 = sshll.u32 %s845_s18, 4  ;;  %v452_v10 = vld [vmem:[%s838_s4] sm:$0xff]  ;;  %v455_v17 = vld [vmem:[%s838_s4 + $0x18] sm:$0xff]  ;;  %vm353_vm1 = vcmask 326656  }
   0xe   : > { %679 = vset.pattern.permute.xlu1 %v714_v0  ;;  %678 = vset.pattern.permute.xlu0 %v714_v0  ;;  %v453_v5 = vld [vmem:[%s838_s4 + $0x8] sm:$0xff]  ;;  %s278_s14 = scalar_lea.vmem %s834_s0, %s644_s6  ;;  %v454_v18 = vld [vmem:[%s838_s4 + $0x10] sm:$0xff]  ;;  %v688_v23 = vld [vmem:[%s836_s2] sm:$0xff]   ;;  %s645_s29 = sshll.u32 %s845_s18, 7 }
   0xf   : > { %436 = vperm.xlu1 %679, %v422_v1   ;;  %426 = vperm.xlu0 %678, %v420_v2   ;;  %s288_s9 = scalar_lea.vmem %s835_s1, %s652_s26  ;;  %v685_v15 = vld [vmem:[%s278_s14 + $0x4] ss:$8 sps:$4 sm:$0xff]   ;;  %v687_v20 = vld [vmem:[%s278_s14] ss:$8 sps:$4 sm:$0xff]   ;;  %s807_s7 = scalar_lea.vmem %s839_s5, %s645_s29 }
  0x10   : > { %v305_v6 = vld [vmem:[%s288_s9 + $0x10] sm:$0xff]  ;;  %v682_v9 = vld [vmem:[%s288_s9 + $0x4] ss:$8 sps:$4 sm:$0xff]   ;;  %v684_v11 = vld [vmem:[%s288_s9] ss:$8 sps:$4 sm:$0xff]   ;;  %v334_v21 = vmax.bf16 %v714_v0, %v685_v15  ;;  %v333_v22 = vmax.bf16 %v714_v0, %v687_v20 }
  0x11   : > { %v636_v7 = vcombine.high %v305_v6, %v305_v6  ;;  %v635_v8 = vcombine.low %v305_v6, %v305_v6  ;;  %v336_v14 = vmax.bf16 %v714_v0, %v682_v9  ;;  %v335_v19 = vmax.bf16 %v714_v0, %v684_v11  ;;  %v689_v24 = vld [vmem:[%s836_s2 + $0x8] sm:$0xff]  }
  0x13   : > { %441 = vperm.xlu1 %679, %v423_v3   ;;  %431 = vperm.xlu0 %678, %v421_v4   ;;  %v338_v12 = vmax.bf16 %v714_v0, %v636_v7  ;;  %v337_v13 = vmax.bf16 %v714_v0, %v635_v8 }
  0x15   : > { %639 = vmatprep.subr.msk.bf16.mxu0 %vm360_vm0, %v338_v12  ;;  %646 = vmatprep.subr.msk.bf16.mxu1 %vm360_vm0, %v338_v12  ;;  %v362_v16 = vsel %vm360_vm0, %v337_v13, 0 }
  0x16   : > { %378 = vmatpush1.bf16.msra.mxu0 %v362_v16  ;;  %649 = vmatpush1.bf16.msra.mxu1 %v362_v16 }
  0x17   : > { %463 = vperm.xlu1 %679, %v453_v5   ;;  %458 = vperm.xlu0 %678, %v452_v10  }
  0x18   : > { %379 = vmatprep.subr.bf16.mxu0 %v336_v14  ;;  %647 = vmatprep.subr.bf16.mxu1 %v336_v14 }
  0x1a   : > { %380 = vmatpush1.bf16.msra.mxu0 %v335_v19  ;;  %650 = vmatpush1.bf16.msra.mxu1 %v335_v19 }
  0x1b   : > { %473 = vperm.xlu1 %679, %v455_v17   ;;  %468 = vperm.xlu0 %678, %v454_v18  }
  0x1c   : > { %381 = vmatprep.subr.bf16.mxu0 %v334_v21  ;;  %648 = vmatprep.subr.bf16.mxu1 %v334_v21 }
  0x1e   : > { %382 = vmatpush1.bf16.msra.mxu0 %v333_v22  ;;  %651 = vmatpush1.bf16.msra.mxu1 %v333_v22 }
  0x21   : > { %640 = vmatmul.mubr.msk.bf16.vlgmr.msra.gmra.mxu0 %vm353_vm1, %v688_v23  ;;  %641 = vmatmul.mubr.msk.bf16.vlgmr.msra.gmra.mxu1 %vm353_vm1, %v689_v24 }
  0x8a   : > { %v427_v25 = vpop.permute.xlu0 %426  ;;  %v437_v26 = vpop.permute.xlu1 %436 }
  0x8e   : > { %v432_v27 = vpop.permute.xlu0 %431  ;;  %v442_v28 = vpop.permute.xlu1 %441 }
  0x92   : > { %v459_v29 = vpop.permute.xlu0 %458  ;;  %v464_v32 = vpop.permute.xlu1 %463 }
  0x96   : > { %v469_v33 = vpop.permute.xlu0 %468  ;;  %v474_v51 = vpop.permute.xlu1 %473 }
  0xe1   : > { %v401_v30 = vpop.f32.mrf.mxu0  ;;  %v411_v31 = vpop.f32.mrf.mxu1 }
  0xe2   : > { %v444_v34 = vmul.f32 %v427_v25, %v401_v30  ;;  %v448_v35 = vmul.f32 %v437_v26, %v411_v31 }
  0xe3   : > { %v403_v36 = vpop.f32.mrf.mxu0  ;;  %v413_v37 = vpop.f32.mrf.mxu1 }
  0xe4   : > { %v476_v38 = vadd.f32 %v459_v29, %v444_v34  ;;  %v480_v39 = vadd.f32 %v469_v33, %v448_v35  ;;  %v445_v40 = vmul.f32 %v427_v25, %v403_v36  ;;  %v449_v41 = vmul.f32 %v437_v26, %v413_v37 }
  0xe5   : > { %v405_v42 = vpop.f32.mrf.mxu0  ;;  %v415_v43 = vpop.f32.mrf.mxu1 }
  0xe6   : > { %v484_v44 = vadd.f32 %v480_v39, %v476_v38  ;;  %v477_v45 = vadd.f32 %v459_v29, %v445_v40  ;;  %v481_v46 = vadd.f32 %v469_v33, %v449_v41  ;;  %v446_v47 = vmul.f32 %v432_v27, %v405_v42 }
  0xe7   : > { %v450_v48 = vmul.f32 %v442_v28, %v415_v43  ;;  %v407_v49 = vpop.f32.mrf.mxu0  ;;  %v417_v50 = vpop.f32.mrf.mxu1 }
  0xe8   : > { %488 = vst [vmem:[%s807_s7] sm:$0xff] %v484_v44  ;;  %v492_v52 = vmul.f32 2.0, %v484_v44  ;;  %v500_v53 = vmul.f32 4.0, %v484_v44  ;;  %v508_v54 = vmul.f32 8.0, %v484_v44  ;;  %v485_v55 = vadd.f32 %v481_v46, %v477_v45 }
  0xe9   : > { %v478_v56 = vadd.f32 %v464_v32, %v446_v47  ;;  %v482_v57 = vadd.f32 %v474_v51, %v450_v48  ;;  %v447_v58 = vmul.f32 %v432_v27, %v407_v49  ;;  %v451_v59 = vmul.f32 %v442_v28, %v417_v50 }
  0xea   : > { %496 = vst [vmem:[%s807_s7 + $0x20] sm:$0xff] %v492_v52  ;;  %504 = vst [vmem:[%s807_s7 + $0x40] sm:$0xff] %v500_v53  ;;  %v493_v60 = vmul.f32 2.0, %v485_v55  ;;  %v501_v61 = vmul.f32 4.0, %v485_v55  ;;  %v509_v62 = vmul.f32 8.0, %v485_v55 }
  0xeb   : > { %512 = vst [vmem:[%s807_s7 + $0x60] sm:$0xff] %v508_v54  ;;  %489 = vst [vmem:[%s807_s7 + $0x8] sm:$0xff] %v485_v55  ;;  %v486_v63 = vadd.f32 %v482_v57, %v478_v56  ;;  %v479_v0 = vadd.f32 %v464_v32, %v447_v58  ;;  %v483_v1 = vadd.f32 %v474_v51, %v451_v59 }
  0xec   : > { %497 = vst [vmem:[%s807_s7 + $0x28] sm:$0xff] %v493_v60  ;;  %505 = vst [vmem:[%s807_s7 + $0x48] sm:$0xff] %v501_v61 }
  0xed   : > { %513 = vst [vmem:[%s807_s7 + $0x68] sm:$0xff] %v509_v62  ;;  %490 = vst [vmem:[%s807_s7 + $0x10] sm:$0xff] %v486_v63  ;;  %v494_v2 = vmul.f32 2.0, %v486_v63  ;;  %v502_v3 = vmul.f32 4.0, %v486_v63  ;;  %v510_v4 = vmul.f32 8.0, %v486_v63  ;;  %v487_v5 = vadd.f32 %v483_v1, %v479_v0 }
  0xef   : > { %498 = vst [vmem:[%s807_s7 + $0x30] sm:$0xff] %v494_v2  ;;  %506 = vst [vmem:[%s807_s7 + $0x50] sm:$0xff] %v502_v3  ;;  %v495_v6 = vmul.f32 2.0, %v487_v5  ;;  %v503_v7 = vmul.f32 4.0, %v487_v5  ;;  %v511_v8 = vmul.f32 8.0, %v487_v5 }
  0xf0   : > { %514 = vst [vmem:[%s807_s7 + $0x70] sm:$0xff] %v510_v4  ;;  %491 = vst [vmem:[%s807_s7 + $0x18] sm:$0xff] %v487_v5 }
  0xf1   : > { %499 = vst [vmem:[%s807_s7 + $0x38] sm:$0xff] %v495_v6  ;;  %507 = vst [vmem:[%s807_s7 + $0x58] sm:$0xff] %v503_v7 }
  0xf2   : > { %515 = vst [vmem:[%s807_s7 + $0x78] sm:$0xff] %v511_v8 }
  0xf3 PF: > { %s15_s20 = sadd.s32 1, %s712_s20   ;;  %s840_s18 = smov %s708_s19 }
  0xf4   : > { %p12_p5 = scmp.ge.s32.totalorder %s15_s20, 4   ;;  %s841_s19 = smov %s843_s21 }
  0xf6   :  { %14 = sbr.rel (!%p12_p5) target bundleno = 2 (0x2), region = 73 }

// kernel: cell_forward.2
= control target key start
LH: loop header
LB: loop body
LE: loop exit
PB: predicated region body
PF: predicated region fallthrough
CT: control target
= control target key end

     0   :  { %s620_s15 = smov 0   ;;  %s622_s16 = smov 0   ;;  %s743_s0 = inlined_call_operand.vmem [shape: bf16[2,16,256], index: 0, kind: input, shape index: {}]   ;;  %s744_s1 = inlined_call_operand.vmem [shape: bf16[2,24,256], index: 1, kind: input, shape index: {}]   ;;  %s745_s2 = inlined_call_operand.vmem [shape: bf16[32,40], index: 2, kind: input, shape index: {}]   ;;  %s746_s3 = inlined_call_operand.vmem [shape: f32[32,1], index: 3, kind: output, shape index: {0}]   ;;  %s747_s4 = inlined_call_operand.vmem [shape: f32[32,1], index: 4, kind: output, shape index: {1}]  }
   0x1   :  { %s624_s17 = smov 0  }
   0x2 LB: > { %s27_s18 = sadd.s32 1, %s587_s16  ;;  %p506_p0 = scmp.ge.s32.totalorder %s591_s17, 1  ;;  %s591_s17 = sphi %s624_s17, %s15_s17   ;;  %s587_s16 = sphi %s622_s16, %s749_s16   ;;  %s583_s15 = sphi %s620_s15, %s748_s15  }
   0x3   : > { %p29_p1 = scmp.ge.s32.totalorder %s27_s18, 2  ;;  %p191_p2 = scmp.lt.s32.totalorder %s591_s17, 3 }
   0x5   : > { %s751_s18 = smov (%p29_p1, %s27_s18), 0  ;;  %p192_p3 = pnand %p506_p0, %p191_p2 }
   0x6   : > { %p226_p4 = scmp.lt.s32.totalorder (!%p192_p3), %s583_s15, 1  ;;  %p246_p5 = scmp.eq.s32.totalorder (!%p192_p3), %s583_s15, 0 }
   0x7   : > { %195 = sbr.rel (%p192_p3) target bundleno = 384 (0x180), region = 32 }
   0xc   : > { %s753_s15 = smov (!%p226_p4, %s583_s15), 1  ;;  %251 = sbr.rel (!%p246_p5) target bundleno = 17 (0x11), region = 36  ;;  %vm252_vm0 = vcmask (%p246_p5), 7168   ;;  %v593_v0 = vmov (%p246_p5), 0.0  }
   0xd   : > { %s524_s19 = sshll.u32 %s753_s15, 4  ;;  %s532_s20 = smul.u32 24, %s753_s15  ;;  %253 = vst.msk [vmem:[%s746_s3] sm:$0xff] (%p246_p5), %vm252_vm0, %v593_v0  ;;  %254 = vst.msk [vmem:[%s746_s3 + $0x8] sm:$0xff] (%p246_p5), %vm252_vm0, %v593_v0 }
   0xe   : > { %s641_s23 = scalar_lea.vmem %s743_s0, %s524_s19  ;;  %255 = vst.msk [vmem:[%s746_s3 + $0x10] sm:$0xff] (%p246_p5), %vm252_vm0, %v593_v0  ;;  %256 = vst.msk [vmem:[%s746_s3 + $0x18] sm:$0xff] (%p246_p5), %vm252_vm0, %v593_v0 }
   0xf   : > { %s243_s26 = scalar_lea.vmem %s744_s1, %s532_s20  ;;  %257 = vst.msk [vmem:[%s747_s4] sm:$0xff] (%p246_p5), %vm252_vm0, %v593_v0  ;;  %258 = vst.msk [vmem:[%s747_s4 + $0x8] sm:$0xff] (%p246_p5), %vm252_vm0, %v593_v0 }
  0x10   : > { %259 = vst.msk [vmem:[%s747_s4 + $0x10] sm:$0xff] (%p246_p5), %vm252_vm0, %v593_v0  ;;  %260 = vst.msk [vmem:[%s747_s4 + $0x18] sm:$0xff] (%p246_p5), %vm252_vm0, %v593_v0 }
  0x11 PF: > { %v265_v1 = vld [vmem:[%s243_s26 + $0x10] sm:$0xff]  ;;  %v561_v4 = vld [vmem:[%s243_s26 + $0x4] ss:$8 sps:$4 sm:$0xff]   ;;  %v594_v5 = vmov 0   ;;  %vm320_vm1 = vcmask 1043456   ;;  %vm313_vm2 = vcmask 326656  }
  0x12   : > { %v516_v2 = vcombine.high %v265_v1, %v265_v1  ;;  %v515_v3 = vcombine.low %v265_v1, %v265_v1  ;;  %359 = vmatprep.mubr.bf16.mxu0 %v594_v5  ;;  %369 = vmatprep.mubr.bf16.mxu1 %v594_v5  ;;  %v563_v6 = vld [vmem:[%s243_s26] ss:$8 sps:$4 sm:$0xff]   ;;  %v296_v9 = vmax.bf16 %v594_v5, %v561_v4  ;;  %v564_v10 = vld [vmem:[%s641_s23 + $0x4] ss:$8 sps:$4 sm:$0xff]   ;;  %vm400_vm3 = vcmask 7168  }
  0x13   : > { %v295_v12 = vmax.bf16 %v594_v5, %v563_v6  ;;  %v566_v13 = vld [vmem:[%s641_s23] ss:$8 sps:$4 sm:$0xff]   ;;  %v294_v14 = vmax.bf16 %v594_v5, %v564_v10 }
  0x14   : > { %v298_v7 = vmax.bf16 %v594_v5, %v516_v2  ;;  %v297_v8 = vmax.bf16 %v594_v5, %v515_v3  ;;  %v293_v15 = vmax.bf16 %v594_v5, %v566_v13  ;;  %v567_v16 = vld [vmem:[%s745_s2] sm:$0xff]   ;;  %v568_v17 = vld [vmem:[%s745_s2 + $0x8] sm:$0xff]  }
  0x15   : > { %v382_v42 = vld [vmem:[%s746_s3 + $0x10] sm:$0xff]  ;;  %v380_v43 = vld [vmem:[%s746_s3] sm:$0xff]  ;;  %v383_v48 = vld [vmem:[%s746_s3 + $0x18] sm:$0xff] }
  0x16   : > { %519 = vmatprep.subr.msk.bf16.mxu0 %vm320_vm1, %v298_v7  ;;  %526 = vmatprep.subr.msk.bf16.mxu1 %vm320_vm1, %v298_v7  ;;  %v322_v11 = vsel %vm320_vm1, %v297_v8, 0  ;;  %v405_v49 = vld [vmem:[%s747_s4] sm:$0xff]  ;;  %v406_v54 = vld [vmem:[%s747_s4 + $0x8] sm:$0xff] }
  0x17   : > { %338 = vmatpush1.bf16.msra.mxu0 %v322_v11  ;;  %529 = vmatpush1.bf16.msra.mxu1 %v322_v11  ;;  %v381_v55 = vld [vmem:[%s746_s3 + $0x8] sm:$0xff]  ;;  %v408_v60 = vld [vmem:[%s747_s4 + $0x18] sm:$0xff]  ;;  %v407_v61 = vld [vmem:[%s747_s4 + $0x10] sm:$0xff] }
  0x18   : > { %339 = vmatprep.subr.bf16.mxu0 %v296_v9  ;;  %527 = vmatprep.subr.bf16.mxu1 %v296_v9 }
  0x1b   : > { %340 = vmatpush1.bf16.msra.mxu0 %v295_v12  ;;  %530 = vmatpush1.bf16.msra.mxu1 %v295_v12 }
  0x1c   : > { %341 = vmatprep.subr.bf16.mxu0 %v294_v14  ;;  %528 = vmatprep.subr.bf16.mxu1 %v294_v14 }
  0x1f   : > { %342 = vmatpush1.bf16.msra.mxu0 %v293_v15  ;;  %531 = vmatpush1.bf16.msra.mxu1 %v293_v15 }
  0x22   : > { %520 = vmatmul.mubr.msk.bf16.vlgmr.msra.gmra.mxu0 %vm313_vm2, %v567_v16  ;;  %521 = vmatmul.mubr.msk.bf16.vlgmr.msra.gmra.mxu1 %vm313_vm2, %v568_v17 }
  0xe2   : > { %v361_v18 = vpop.f32.mrf.mxu0  ;;  %v371_v19 = vpop.f32.mrf.mxu1 }
  0xe3   : > { %v409_v27 = vmul.f32 %v361_v18, %v361_v18  ;;  %v413_v38 = vmul.f32 %v371_v19, %v371_v19 }
  0xe4   : > { %v363_v20 = vpop.f32.mrf.mxu0  ;;  %v373_v21 = vpop.f32.mrf.mxu1 }
  0xe5   : > { %v410_v22 = vmul.f32 %v363_v20, %v363_v20  ;;  %v390_v23 = vadd.f32 %v373_v21, %v371_v19  ;;  %v384_v24 = vadd.f32 %v363_v20, %v361_v18  ;;  %v414_v34 = vmul.f32 %v373_v21, %v373_v21 }
  0xe6   : > { %v365_v25 = vpop.f32.mrf.mxu0  ;;  %v375_v26 = vpop.f32.mrf.mxu1 }
  0xe7   : > { %391 = vadd.xlane.f32.xlu1 %v390_v23  ;;  %385 = vadd.xlane.f32.xlu0 %v384_v24  ;;  %v417_v32 = vadd.f32 %v410_v22, %v409_v27  ;;  %v411_v33 = vmul.f32 %v365_v25, %v365_v25  ;;  %v415_v39 = vmul.f32 %v375_v26, %v375_v26 }
  0xe8   : > { %v367_v28 = vpop.f32.mrf.mxu0  ;;  %v377_v29 = vpop.f32.mrf.mxu1  ;;  %v423_v41 = vadd.f32 %v414_v34, %v413_v38 }
  0xe9   : > { %v412_v30 = vmul.f32 %v367_v28, %v367_v28  ;;  %v393_v31 = vadd.f32 %v377_v29, %v375_v26  ;;  %v387_v35 = vadd.f32 %v367_v28, %v365_v25  ;;  %v416_v36 = vmul.f32 %v377_v29, %v377_v29 }
  0xeb   : > { %394 = vadd.xlane.f32.xlu1 %v393_v31  ;;  %418 = vadd.xlane.f32.xlu0 %v417_v32  ;;  %v420_v37 = vadd.f32 %v412_v30, %v411_v33  ;;  %v426_v40 = vadd.f32 %v416_v36, %v415_v39 }
  0xef   : > { %421 = vadd.xlane.f32.xlu1 %v420_v37  ;;  %388 = vadd.xlane.f32.xlu0 %v387_v35 }
  0xf3   : > { %427 = vadd.xlane.f32.xlu1 %v426_v40  ;;  %424 = vadd.xlane.f32.xlu0 %v423_v41 }
 0x170   : > { %v392_v44 = vpop.xlane.xlu1 %391  ;;  %v386_v45 = vpop.xlane.xlu0 %385 }
 0x171   : > { %v398_v46 = vadd.f32 %v392_v44, %v382_v42  ;;  %v396_v47 = vadd.f32 %v386_v45, %v380_v43 }
 0x173   : > { %403 = vst.msk [vmem:[%s746_s3 + $0x10] sm:$0xff] %vm400_vm3, %v398_v46  ;;  %401 = vst.msk [vmem:[%s746_s3] sm:$0xff] %vm400_vm3, %v396_v47 }
 0x174   : > { %v395_v50 = vpop.xlane.xlu1 %394  ;;  %v419_v51 = vpop.xlane.xlu0 %418 }
 0x175   : > { %v399_v52 = vadd.f32 %v395_v50, %v383_v48  ;;  %v429_v53 = vadd.f32 %v419_v51, %v405_v49 }
 0x177   : > { %404 = vst.msk [vmem:[%s746_s3 + $0x18] sm:$0xff] %vm400_vm3, %v399_v52  ;;  %433 = vst.msk [vmem:[%s747_s4] sm:$0xff] %vm400_vm3, %v429_v53 }
 0x178   : > { %v422_v56 = vpop.xlane.xlu1 %421  ;;  %v389_v57 = vpop.xlane.xlu0 %388 }
 0x179   : > { %v430_v58 = vadd.f32 %v422_v56, %v406_v54  ;;  %v397_v59 = vadd.f32 %v389_v57, %v381_v55 }
 0x17b   : > { %434 = vst.msk [vmem:[%s747_s4 + $0x8] sm:$0xff] %vm400_vm3, %v430_v58  ;;  %402 = vst.msk [vmem:[%s746_s3 + $0x8] sm:$0xff] %vm400_vm3, %v397_v59 }
 0x17c   : > { %v428_v62 = vpop.xlane.xlu1 %427  ;;  %v425_v63 = vpop.xlane.xlu0 %424 }
 0x17d   : > { %v432_v0 = vadd.f32 %v428_v62, %v408_v60  ;;  %v431_v1 = vadd.f32 %v425_v63, %v407_v61 }
 0x17f   : > { %436 = vst.msk [vmem:[%s747_s4 + $0x18] sm:$0xff] %vm400_vm3, %v432_v0  ;;  %435 = vst.msk [vmem:[%s747_s4 + $0x10] sm:$0xff] %vm400_vm3, %v431_v1 }
 0x180 PF: > { %s15_s17 = sadd.s32 1, %s591_s17   ;;  %s748_s15 = smov %s587_s16 }
 0x181   : > { %p12_p6 = scmp.ge.s32.totalorder %s15_s17, 4   ;;  %s749_s16 = smov %s751_s18 }
 0x183   :  { %14 = sbr.rel (!%p12_p6) target bundleno = 2 (0x2), region = 73 }

</bundles_post_ra>
